<compile_context>
chip_gen: v6e
topology: v6e:2x2x1
jax: 0.10.0
libtpu: 0.0.40
codegen_flags: <defaults>
</compile_context>

<pallas_src>
import math
from functools import partial

import jax
import jax.numpy as jnp
from jax.experimental import pallas as pl
from jax.experimental.pallas import tpu as pltpu


def _round_up(x: int, m: int) -> int:
    return (x + m - 1) // m * m


_K_ALIGN = 512                      # K padded to a multiple of this (allows tk >= 512)
_VMEM_BUDGET = 40 * 1024 * 1024     # conservative tile-plan budget (fits v7x's 64 MiB TC)


# ----------------------------------------------------------------------------
# Kernel: grid = (M_pad // tm, K_pad // tk)
#   fc6 partials accumulate (f32) directly into the resident output block; on
#   the last K step the fused epilogue (bias + ReLU + fc7 + bias + ReLU) runs
#   in place and the row block is written back lane-dense.
# ----------------------------------------------------------------------------
def cascade_box_head_kernel(x_ref, w6_ref, b6_ref, w7_ref, b7_ref, o_ref):
    k = pl.program_id(1)

    @pl.when(k == 0)
    def _():
        o_ref[...] = jnp.zeros_like(o_ref)

    # fc6 partial:  (tm, tk) @ (tk, R_pad) -> (tm, R_pad), f32 accumulation
    # into the resident output block (no separate scratch accumulator).
    o_ref[...] += jnp.dot(
        x_ref[...], w6_ref[...], preferred_element_type=jnp.float32
    )

    @pl.when(k == pl.num_programs(1) - 1)
    def _():
        # Fused epilogue in f32: bias + ReLU, fc7 on the MXU, bias + ReLU.
        h = jnp.maximum(o_ref[...] + b6_ref[...], 0.0)
        h = jnp.dot(
            h.astype(w7_ref.dtype), w7_ref[...], preferred_element_type=jnp.float32
        )
        o_ref[...] = jnp.maximum(h + b7_ref[...], 0.0).astype(o_ref.dtype)


# ----------------------------------------------------------------------------
# VMEM tile-plan estimate (bytes) for a given (tm, tk).
# ----------------------------------------------------------------------------
def _vmem_plan_bytes(tm, tk, r_pad, itemsize):
    x_blk = 2 * tm * tk * itemsize          # streamed, double-buffered
    w6_blk = 2 * tk * r_pad * itemsize      # streamed, double-buffered
    w7_blk = 1 * r_pad * r_pad * itemsize   # constant, single-buffered
    b_blk = 2 * r_pad * 4                   # two biases, single-buffered (f32)
    out_blk = 2 * tm * r_pad * 4            # resident f32 accumulator + writeback
    epilog = 2 * tm * r_pad * 4             # epilogue temporaries (h, cast)
    return x_blk + w6_blk + w7_blk + b_blk + out_blk + epilog


def _choose_tiles(n, k_pad, r_pad, itemsize):
    m16 = _round_up(max(n, 16), 16)         # 16-row multiple: unmasked bf16 sublanes
    if m16 <= 128:
        tm = m16                            # single M block (tiny batches)
    elif m16 <= 1024:
        tm = _round_up((m16 + 1) // 2, 16)  # two M blocks -> both v7x TCs busy,
    else:                                   # w6 streamed only twice
        tm = 512
    while True:
        m_pad = _round_up(m16, tm)
        for cand in (2048, 1024, 512, 256, 128):
            if k_pad % cand == 0 and _vmem_plan_bytes(tm, cand, r_pad, itemsize) <= _VMEM_BUDGET:
                return tm, m_pad, cand
        if tm <= 16:
            return tm, m_pad, 128           # give up shrinking
        tm = max(16, _round_up(tm // 2, 16))


# ----------------------------------------------------------------------------
# One-time parameter preparation: transpose, zero-pad to lane-dense (x128 rep,
# x512 K) layout, cast weights to the compute dtype.  bf16 is recommended on
# ALL generations (v5e MXU is natively bf16 and v5e is the most HBM-bound).
# Biases stay f32 (epilogue runs in f32).
# ----------------------------------------------------------------------------
def prepare_params(w6, b6, w7, b7, compute_dtype=jnp.bfloat16):
    rep, k = w6.shape
    k_pad = _round_up(k, _K_ALIGN)
    r_pad = _round_up(rep, 128)

    w6_t = jnp.zeros((k_pad, r_pad), compute_dtype)
    w6_t = w6_t.at[:k, :rep].set(w6.T.astype(compute_dtype))
    w7_t = jnp.zeros((r_pad, r_pad), compute_dtype)
    w7_t = w7_t.at[:rep, :rep].set(w7.T.astype(compute_dtype))
    b6_p = jnp.zeros((1, r_pad), jnp.float32).at[0, :rep].set(b6.astype(jnp.float32))
    b7_p = jnp.zeros((1, r_pad), jnp.float32).at[0, :rep].set(b7.astype(jnp.float32))
    return w6_t, b6_p, w7_t, b7_p


# ----------------------------------------------------------------------------
# Jitted forward wrapper.
# ----------------------------------------------------------------------------
@partial(jax.jit, static_argnames=("rep",))
def cascade_box_head(x_nchw, w6_t, b6_p, w7_t, b7_p, *, rep):
    n = x_nchw.shape[0]
    k = x_nchw.shape[1] * x_nchw.shape[2] * x_nchw.shape[3]
    k_pad, r_pad = w6_t.shape
    compute_dtype = w6_t.dtype
    itemsize = jnp.dtype(compute_dtype).itemsize

    tm, m_pad, tk = _choose_tiles(n, k_pad, r_pad, itemsize)
    grid = (m_pad // tm, k_pad // tk)

    # torch.flatten(x, 1) == row-major reshape; pad only when needed (typical
    # detection heads, e.g. 256*7*7 with a tm-aligned RoI batch, skip the copy).
    x_flat = x_nchw.reshape(n, -1).astype(compute_dtype)
    if n != m_pad or k != k_pad:
        x_p = jnp.pad(x_flat, ((0, m_pad - n), (0, k_pad - k)))
    else:
        x_p = x_flat

    vmem_limit = int(
        min(48 * 1024 * 1024,
            max(32 * 1024 * 1024,
                _vmem_plan_bytes(tm, tk, r_pad, itemsize) + 8 * 1024 * 1024))
    )

    cost = pl.CostEstimate(
        flops=2 * m_pad * k_pad * r_pad + 2 * m_pad * r_pad * r_pad,
        transcendentals=0,
        bytes_accessed=(
            m_pad * k_pad * itemsize                        # x
            + (m_pad // tm) * k_pad * r_pad * itemsize      # w6 (once per M block)
            + r_pad * r_pad * itemsize                      # w7
            + 2 * r_pad * 4                                 # biases
            + m_pad * r_pad * 4                             # output
        ),
    )

    out_pad = pl.pallas_call(
        cascade_box_head_kernel,
        out_shape=jax.ShapeDtypeStruct((m_pad, r_pad), jnp.float32),
        grid_spec=pltpu.PrefetchScalarGridSpec(
            num_scalar_prefetch=0,
            grid=grid,
            in_specs=[
                # streamed blocks (default double-buffering)
                pl.BlockSpec((tm, tk), lambda i, kk: (i, kk)),          # x tile
                pl.BlockSpec((tk, r_pad), lambda i, kk: (kk, 0)),       # w6 tile
                # constant blocks: single-buffered to reclaim VMEM
                pl.BlockSpec((1, r_pad), lambda i, kk: (0, 0),
                             pipeline_mode=pl.Buffered(1)),             # b6
                pl.BlockSpec((r_pad, r_pad), lambda i, kk: (0, 0),
                             pipeline_mode=pl.Buffered(1)),             # w7
                pl.BlockSpec((1, r_pad), lambda i, kk: (0, 0),
                             pipeline_mode=pl.Buffered(1)),             # b7
            ],
            out_specs=pl.BlockSpec((tm, r_pad), lambda i, kk: (i, 0)),
        ),
        compiler_params=pltpu.CompilerParams(
            dimension_semantics=("parallel", "arbitrary"),
            vmem_limit_bytes=vmem_limit,
        ),
        cost_estimate=cost,
    )(x_p, w6_t, b6_p, w7_t, b7_p)

    # Crop padding AFTER the in-kernel ReLU (padded cols/rows are exact zeros /
    # unused garbage rows respectively).
    return out_pad[:n, :rep]


# ----------------------------------------------------------------------------
# Deterministic init mimicking nn.Linear default (uniform +-1/sqrt(fan_in)).
# ----------------------------------------------------------------------------
def init_linear_params(key, out_features, in_features):
    kw, kb = jax.random.split(key)
    bound = 1.0 / math.sqrt(in_features)
    w = jax.random.uniform(kw, (out_features, in_features), jnp.float32,
                           minval=-bound, maxval=bound)
    b = jax.random.uniform(kb, (out_features,), jnp.float32,
                           minval=-bound, maxval=bound)
    return w, b


if __name__ == "__main__":
    # Small shapes consistent with the module:
    #   in_channels=4, roi_size=(4, 4), representation_size=32, batch N=8
    N, C, H, W = 8, 4, 4, 4
    REP = 32
    K = C * H * W

    key = jax.random.PRNGKey(0)
    kx, k6, k7 = jax.random.split(key, 3)

    x = jax.random.normal(kx, (N, C, H, W), jnp.float32)
    w6, b6 = init_linear_params(k6, REP, K)
    w7, b7 = init_linear_params(k7, REP, REP)

    # Pure-JAX reference (same math as the PyTorch module).
    ref = x.reshape(N, -1)
    ref = jnp.maximum(ref @ w6.T + b6, 0.0)
    ref = jnp.maximum(ref @ w7.T + b7, 0.0)

    # --- f32 path (strict check) -----------------------------------------
    params_f32 = prepare_params(w6, b6, w7, b7, compute_dtype=jnp.float32)
    out = cascade_box_head(x, *params_f32, rep=REP)
    out = jax.block_until_ready(out)
    assert out.shape == (N, REP)
    assert jnp.allclose(out, ref, atol=1e-5, rtol=1e-5)

    # --- bf16 path (recommended default on v5e/v6e/v7x: halves the dominant
    #     weight/activation HBM streams; f32 accumulation + f32 epilogue) ----
    params_bf16 = prepare_params(w6, b6, w7, b7, compute_dtype=jnp.bfloat16)
    out_bf16 = cascade_box_head(x, *params_bf16, rep=REP)
    out_bf16 = jax.block_until_ready(out_bf16)
    assert out_bf16.shape == (N, REP)
    assert jnp.allclose(out_bf16, ref, atol=1e-1, rtol=1e-1)

    print("KERNEL_OK")
</pallas_src>

<mosaic_0001>
module attributes {stable_mosaic.version = 11 : i64} {
  func.func @cascade_box_head_kernel(%arg0: i32, %arg1: i32, %arg2: memref<16x512xf32, #tpu.memory_space<vmem>>, %arg3: memref<512x128xf32, #tpu.memory_space<vmem>>, %arg4: memref<1x128xf32, #tpu.memory_space<vmem>>, %arg5: memref<128x128xf32, #tpu.memory_space<vmem>>, %arg6: memref<1x128xf32, #tpu.memory_space<vmem>>, %arg7: memref<16x128xf32, #tpu.memory_space<vmem>>) attributes {dimension_semantics = [#tpu.dimension_semantics<parallel>, #tpu.dimension_semantics<arbitrary>], iteration_bounds = array<i64: 1, 1>, scalar_prefetch = 0 : i64, scratch_operands = 0 : i64, tpu.core_type = #tpu.core_type<tc>, window_params = [{transform_indices = @transform_0, window_bounds = array<i64: 16, 512>}, {transform_indices = @transform_1, window_bounds = array<i64: 512, 128>}, {pipeline_mode = #tpu.pipeline_mode<synchronous>, transform_indices = @transform_2, window_bounds = array<i64: 1, 128>}, {pipeline_mode = #tpu.pipeline_mode<synchronous>, transform_indices = @transform_3, window_bounds = array<i64: 128, 128>}, {pipeline_mode = #tpu.pipeline_mode<synchronous>, transform_indices = @transform_4, window_bounds = array<i64: 1, 128>}, {transform_indices = @transform_5, window_bounds = array<i64: 16, 128>}]} {
    %c0_i32 = arith.constant 0 : i32
    %0 = arith.cmpi eq, %arg1, %c0_i32 : i32
    %1 = arith.extui %0 : i1 to i32
    %c0_i32_0 = arith.constant 0 : i32
    %2 = arith.cmpi ne, %1, %c0_i32_0 : i32
    scf.if %2 {
      %cst_10 = arith.constant 0.000000e+00 : f32
      %12 = vector.broadcast %cst_10 : f32 to vector<16x128xf32>
      %c0_11 = arith.constant 0 : index
      %c0_12 = arith.constant 0 : index
      %13 = vector.load %arg7[%c0_11, %c0_12] : memref<16x128xf32, #tpu.memory_space<vmem>>, vector<16x128xf32>
      tpu.vector_store %arg7[%c0_11, %c0_12], %12 {strides = array<i32>} : memref<16x128xf32, #tpu.memory_space<vmem>>, vector<16x128xf32>,
    } else {
    }
    %c0 = arith.constant 0 : index
    %c0_1 = arith.constant 0 : index
    %3 = vector.load %arg7[%c0, %c0_1] : memref<16x128xf32, #tpu.memory_space<vmem>>, vector<16x128xf32>
    %c0_2 = arith.constant 0 : index
    %c0_3 = arith.constant 0 : index
    %4 = vector.load %arg2[%c0_2, %c0_3] : memref<16x512xf32, #tpu.memory_space<vmem>>, vector<16x512xf32>
    %c0_4 = arith.constant 0 : index
    %c0_5 = arith.constant 0 : index
    %5 = vector.load %arg3[%c0_4, %c0_5] : memref<512x128xf32, #tpu.memory_space<vmem>>, vector<512x128xf32>
    %cst = arith.constant dense<0.000000e+00> : vector<16x128xf32>
    %6 = tpu.matmul %4, %5, %cst {dimension_numbers = #tpu.dot_dimension_numbers<[1], [0], [0], [1], [0, 0, 1, 1], [], []>} : vector<16x512xf32>, vector<512x128xf32>, vector<16x128xf32> -> vector<16x128xf32>
    %7 = arith.addf %3, %6 : vector<16x128xf32>
    %c0_6 = arith.constant 0 : index
    %c0_7 = arith.constant 0 : index
    %8 = vector.load %arg7[%c0_6, %c0_7] : memref<16x128xf32, #tpu.memory_space<vmem>>, vector<16x128xf32>
    tpu.vector_store %arg7[%c0_6, %c0_7], %7 {strides = array<i32>} : memref<16x128xf32, #tpu.memory_space<vmem>>, vector<16x128xf32>,
    %c0_i32_8 = arith.constant 0 : i32
    %9 = arith.cmpi eq, %arg1, %c0_i32_8 : i32
    %10 = arith.extui %9 : i1 to i32
    %c0_i32_9 = arith.constant 0 : i32
    %11 = arith.cmpi ne, %10, %c0_i32_9 : i32
    scf.if %11 {
      %c0_10 = arith.constant 0 : index
      %c0_11 = arith.constant 0 : index
      %12 = vector.load %arg7[%c0_10, %c0_11] : memref<16x128xf32, #tpu.memory_space<vmem>>, vector<16x128xf32>
      %c0_12 = arith.constant 0 : index
      %c0_13 = arith.constant 0 : index
      %13 = vector.load %arg4[%c0_12, %c0_13] : memref<1x128xf32, #tpu.memory_space<vmem>>, vector<1x128xf32>
      %14 = vector.broadcast %13 : vector<1x128xf32> to vector<16x128xf32>
      %15 = arith.addf %12, %14 : vector<16x128xf32>
      %cst_14 = arith.constant 0.000000e+00 : f32
      %16 = vector.broadcast %cst_14 : f32 to vector<16x128xf32>
      %17 = arith.maximumf %15, %16 : vector<16x128xf32>
      %c0_15 = arith.constant 0 : index
      %c0_16 = arith.constant 0 : index
      %18 = vector.load %arg5[%c0_15, %c0_16] : memref<128x128xf32, #tpu.memory_space<vmem>>, vector<128x128xf32>
      %cst_17 = arith.constant dense<0.000000e+00> : vector<16x128xf32>
      %19 = tpu.matmul %17, %18, %cst_17 {dimension_numbers = #tpu.dot_dimension_numbers<[1], [0], [0], [1], [0, 0, 1, 1], [], []>} : vector<16x128xf32>, vector<128x128xf32>, vector<16x128xf32> -> vector<16x128xf32>
      %c0_18 = arith.constant 0 : index
      %c0_19 = arith.constant 0 : index
      %20 = vector.load %arg6[%c0_18, %c0_19] : memref<1x128xf32, #tpu.memory_space<vmem>>, vector<1x128xf32>
      %21 = vector.broadcast %20 : vector<1x128xf32> to vector<16x128xf32>
      %22 = arith.addf %19, %21 : vector<16x128xf32>
      %cst_20 = arith.constant 0.000000e+00 : f32
      %23 = vector.broadcast %cst_20 : f32 to vector<16x128xf32>
      %24 = arith.maximumf %22, %23 : vector<16x128xf32>
      %c0_21 = arith.constant 0 : index
      %c0_22 = arith.constant 0 : index
      %25 = vector.load %arg7[%c0_21, %c0_22] : memref<16x128xf32, #tpu.memory_space<vmem>>, vector<16x128xf32>
      tpu.vector_store %arg7[%c0_21, %c0_22], %24 {strides = array<i32>} : memref<16x128xf32, #tpu.memory_space<vmem>>, vector<16x128xf32>,
    } else {
    }
    return
  }
  func.func @transform_0(%arg0: i32, %arg1: i32) -> (i32, i32) {
    %c0_i32 = arith.constant 0 : i32
    return %arg0, %arg1 : i32, i32
  }
  func.func @transform_1(%arg0: i32, %arg1: i32) -> (i32, i32) {
    %c0_i32 = arith.constant 0 : i32
    %c0_i32_0 = arith.constant 0 : i32
    return %arg1, %c0_i32 : i32, i32
  }
  func.func @transform_2(%arg0: i32, %arg1: i32) -> (i32, i32) {
    %c0_i32 = arith.constant 0 : i32
    %c0_i32_0 = arith.constant 0 : i32
    %c0_i32_1 = arith.constant 0 : i32
    return %c0_i32, %c0_i32_0 : i32, i32
  }
  func.func @transform_3(%arg0: i32, %arg1: i32) -> (i32, i32) {
    %c0_i32 = arith.constant 0 : i32
    %c0_i32_0 = arith.constant 0 : i32
    %c0_i32_1 = arith.constant 0 : i32
    return %c0_i32, %c0_i32_0 : i32, i32
  }
  func.func @transform_4(%arg0: i32, %arg1: i32) -> (i32, i32) {
    %c0_i32 = arith.constant 0 : i32
    %c0_i32_0 = arith.constant 0 : i32
    %c0_i32_1 = arith.constant 0 : i32
    return %c0_i32, %c0_i32_0 : i32, i32
  }
  func.func @transform_5(%arg0: i32, %arg1: i32) -> (i32, i32) {
    %c0_i32 = arith.constant 0 : i32
    %c0_i32_0 = arith.constant 0 : i32
    return %arg0, %c0_i32 : i32, i32
  }
}

</mosaic_0001>

<bundles_post_ra>
// kernel: cascade_box_head.1
= control target key start
LH: loop header
LB: loop body
LE: loop exit
PB: predicated region body
PF: predicated region fallthrough
CT: control target
= control target key end

     0   :  { %10 = vsyncpa [#allocation3], 0  ;;  %s548_s18 = smov [#allocation2]   ;;  %s668_s0 = inlined_call_operand.vmem [shape: f32[16,512], index: 0, kind: input, shape index: {}]   ;;  %s669_s1 = inlined_call_operand.hbm [shape: f32[512,128], index: 1, kind: input, shape index: {}]   ;;  %s670_s2 = inlined_call_operand.vmem [shape: f32[1,128], index: 2, kind: input, shape index: {}]   ;;  %s671_s3 = inlined_call_operand.vmem [shape: f32[128,128], index: 3, kind: input, shape index: {}]   ;;  %s672_s4 = inlined_call_operand.vmem [shape: f32[1,128], index: 4, kind: input, shape index: {}]   ;;  %s673_s5 = inlined_call_operand.vmem [shape: f32[16,128], index: 5, kind: output, shape index: {}]  }
   0x1   :  { %s18_s19 = sshll.u32 %s548_s18, 4  ;;  %s19_s19 = int_to_ptr.vmem [resolvable:$true] %s18_s19 }
   0x2   :  { %s534_s20 = scalar_lea.vmem %s19_s19, 8192  ;;  %p539_p1 = scmp.lt.s32.totalorder %s19_s19, %s19_s19 }
   0x3   :  { %p535_p0 = scmp.ne.s32.totalorder %s19_s19, %s534_s20  ;;  %p540_p2 = scmp.lt.s32.totalorder %s534_s20, %s534_s20 }
   0x5   :  { %p541_p3 = por %p540_p2, %p539_p1 }
   0x7   :  { %p542_p4 = pnand %p541_p3, %p535_p0 }
   0x9   :  { %545 = shalt.err (!%p542_p4)
}
   0xa   :  { %s549_s21 = smov 128   ;;  %s550_s22 = smov 8  }
   0xb   :  { %24 = dma.hbm_to_vmem [thread:$0]  %s669_s1, 8192, %s19_s19, [#allocation3], %s549_s21, %s549_s21, %s550_s22  }
   0xc   :  { %546 = dma.done.wait [#allocation3], 8192  }
   0xd   :  { %547 = vsyncadd [#allocation3], 4294959104  ;;  %v81_v0 = vld [vmem:[#allocation2 + $0xf8] sm:$0xff]  ;;  %v80_v4 = vld [vmem:[#allocation2 + $0xf0] sm:$0xff] }
   0xe   :  { %v113_v1 = vld [vmem:[#allocation2 + $0x1f8] sm:$0xff]  ;;  %393 = vmatprep.subr.mxu0 %v81_v0  ;;  %v112_v5 = vld [vmem:[#allocation2 + $0x1f0] sm:$0xff]  ;;  %v79_v8 = vld [vmem:[#allocation2 + $0xe8] sm:$0xff] }
   0xf   :  { %v65_v2 = vld [vmem:[#allocation2 + $0x78] sm:$0xff]  ;;  %431 = vmatprep.subr.mxu1 %v113_v1  ;;  %v64_v6 = vld [vmem:[#allocation2 + $0x70] sm:$0xff]  ;;  %v111_v9 = vld [vmem:[#allocation2 + $0x1e8] sm:$0xff] }
  0x10   :  { %v97_v3 = vld [vmem:[#allocation2 + $0x178] sm:$0xff]  ;;  %394 = vmatpush3.msra.mxu0 %v65_v2  ;;  %v96_v7 = vld [vmem:[#allocation2 + $0x170] sm:$0xff]  ;;  %v63_v10 = vld [vmem:[#allocation2 + $0x68] sm:$0xff] }
  0x11   :  { %432 = vmatpush3.msra.mxu1 %v97_v3  ;;  %395 = vmatprep.subr.mxu0 %v80_v4  ;;  %v95_v11 = vld [vmem:[#allocation2 + $0x168] sm:$0xff]  ;;  %v78_v12 = vld [vmem:[#allocation2 + $0xe0] sm:$0xff]  ;;  %v77_v16 = vld [vmem:[#allocation2 + $0xd8] sm:$0xff] }
  0x12   :  { %433 = vmatprep.subr.mxu1 %v112_v5  ;;  %396 = vmatpush3.msra.mxu0 %v64_v6  ;;  %v110_v13 = vld [vmem:[#allocation2 + $0x1e0] sm:$0xff]  ;;  %v109_v17 = vld [vmem:[#allocation2 + $0x1d8] sm:$0xff]  ;;  %v76_v20 = vld [vmem:[#allocation2 + $0xd0] sm:$0xff] }
  0x13   :  { %434 = vmatpush3.msra.mxu1 %v96_v7  ;;  %397 = vmatprep.subr.mxu0 %v79_v8  ;;  %v62_v14 = vld [vmem:[#allocation2 + $0x60] sm:$0xff]  ;;  %v61_v18 = vld [vmem:[#allocation2 + $0x58] sm:$0xff]  ;;  %v108_v21 = vld [vmem:[#allocation2 + $0x1d0] sm:$0xff] }
  0x14   :  { %435 = vmatprep.subr.mxu1 %v111_v9  ;;  %v94_v15 = vld [vmem:[#allocation2 + $0x160] sm:$0xff]  ;;  %398 = vmatpush3.msra.mxu0 %v63_v10  ;;  %v93_v19 = vld [vmem:[#allocation2 + $0x158] sm:$0xff]  ;;  %v60_v22 = vld [vmem:[#allocation2 + $0x50] sm:$0xff] }
  0x15   :  { %436 = vmatpush3.msra.mxu1 %v95_v11  ;;  %399 = vmatprep.subr.mxu0 %v78_v12  ;;  %v92_v23 = vld [vmem:[#allocation2 + $0x150] sm:$0xff]  ;;  %v75_v24 = vld [vmem:[#allocation2 + $0xc8] sm:$0xff]  ;;  %v74_v28 = vld [vmem:[#allocation2 + $0xc0] sm:$0xff] }
  0x16   :  { %437 = vmatprep.subr.mxu1 %v110_v13  ;;  %400 = vmatpush3.msra.mxu0 %v62_v14  ;;  %v107_v25 = vld [vmem:[#allocation2 + $0x1c8] sm:$0xff]  ;;  %v106_v29 = vld [vmem:[#allocation2 + $0x1c0] sm:$0xff]  ;;  %v73_v32 = vld [vmem:[#allocation2 + $0xb8] sm:$0xff] }
  0x17   :  { %438 = vmatpush3.msra.mxu1 %v94_v15  ;;  %401 = vmatprep.subr.mxu0 %v77_v16  ;;  %v59_v26 = vld [vmem:[#allocation2 + $0x48] sm:$0xff]  ;;  %v58_v30 = vld [vmem:[#allocation2 + $0x40] sm:$0xff]  ;;  %v105_v33 = vld [vmem:[#allocation2 + $0x1b8] sm:$0xff] }
  0x18   :  { %439 = vmatprep.subr.mxu1 %v109_v17  ;;  %402 = vmatpush3.msra.mxu0 %v61_v18  ;;  %v91_v27 = vld [vmem:[#allocation2 + $0x148] sm:$0xff]  ;;  %v90_v31 = vld [vmem:[#allocation2 + $0x140] sm:$0xff]  ;;  %v57_v34 = vld [vmem:[#allocation2 + $0x38] sm:$0xff] }
  0x19   :  { %440 = vmatpush3.msra.mxu1 %v93_v19  ;;  %403 = vmatprep.subr.mxu0 %v76_v20  ;;  %v89_v35 = vld [vmem:[#allocation2 + $0x138] sm:$0xff]  ;;  %v72_v36 = vld [vmem:[#allocation2 + $0xb0] sm:$0xff]  ;;  %v71_v40 = vld [vmem:[#allocation2 + $0xa8] sm:$0xff] }
  0x1a   :  { %441 = vmatprep.subr.mxu1 %v108_v21  ;;  %404 = vmatpush3.msra.mxu0 %v60_v22  ;;  %v104_v37 = vld [vmem:[#allocation2 + $0x1b0] sm:$0xff]  ;;  %v103_v41 = vld [vmem:[#allocation2 + $0x1a8] sm:$0xff]  ;;  %v70_v44 = vld [vmem:[#allocation2 + $0xa0] sm:$0xff] }
  0x1b   :  { %442 = vmatpush3.msra.mxu1 %v92_v23  ;;  %405 = vmatprep.subr.mxu0 %v75_v24  ;;  %v56_v38 = vld [vmem:[#allocation2 + $0x30] sm:$0xff]  ;;  %v55_v42 = vld [vmem:[#allocation2 + $0x28] sm:$0xff]  ;;  %v102_v45 = vld [vmem:[#allocation2 + $0x1a0] sm:$0xff] }
  0x1c   :  { %443 = vmatprep.subr.mxu1 %v107_v25  ;;  %406 = vmatpush3.msra.mxu0 %v59_v26  ;;  %v88_v39 = vld [vmem:[#allocation2 + $0x130] sm:$0xff]  ;;  %v87_v43 = vld [vmem:[#allocation2 + $0x128] sm:$0xff]  ;;  %v54_v46 = vld [vmem:[#allocation2 + $0x20] sm:$0xff] }
  0x1d   :  { %444 = vmatpush3.msra.mxu1 %v91_v27  ;;  %407 = vmatprep.subr.mxu0 %v74_v28  ;;  %v86_v47 = vld [vmem:[#allocation2 + $0x120] sm:$0xff]  ;;  %v69_v48 = vld [vmem:[#allocation2 + $0x98] sm:$0xff]  ;;  %v68_v52 = vld [vmem:[#allocation2 + $0x90] sm:$0xff] }
  0x1e   :  { %445 = vmatprep.subr.mxu1 %v106_v29  ;;  %408 = vmatpush3.msra.mxu0 %v58_v30  ;;  %v101_v49 = vld [vmem:[#allocation2 + $0x198] sm:$0xff]  ;;  %v100_v53 = vld [vmem:[#allocation2 + $0x190] sm:$0xff]  ;;  %v67_v56 = vld [vmem:[#allocation2 + $0x88] sm:$0xff] }
  0x1f   :  { %446 = vmatpush3.msra.mxu1 %v90_v31  ;;  %409 = vmatprep.subr.mxu0 %v73_v32  ;;  %v53_v50 = vld [vmem:[#allocation2 + $0x18] sm:$0xff]  ;;  %v52_v54 = vld [vmem:[#allocation2 + $0x10] sm:$0xff]  ;;  %v99_v57 = vld [vmem:[#allocation2 + $0x188] sm:$0xff] }
  0x20   :  { %447 = vmatprep.subr.mxu1 %v105_v33  ;;  %410 = vmatpush3.msra.mxu0 %v57_v34  ;;  %v85_v51 = vld [vmem:[#allocation2 + $0x118] sm:$0xff]  ;;  %v84_v55 = vld [vmem:[#allocation2 + $0x110] sm:$0xff]  ;;  %v51_v58 = vld [vmem:[#allocation2 + $0x8] sm:$0xff] }
  0x21   :  { %448 = vmatpush3.msra.mxu1 %v89_v35  ;;  %411 = vmatprep.subr.mxu0 %v72_v36  ;;  %v83_v59 = vld [vmem:[#allocation2 + $0x108] sm:$0xff]  ;;  %v66_v60 = vld [vmem:[#allocation2 + $0x80] sm:$0xff]  ;;  %v45_v1 = vld [vmem:[%s668_s0 + $0x18] sm:$0xff] }
  0x22   :  { %449 = vmatprep.subr.mxu1 %v104_v37  ;;  %412 = vmatpush3.msra.mxu0 %v56_v38  ;;  %v98_v61 = vld [vmem:[#allocation2 + $0x180] sm:$0xff]  ;;  %v43_v63 = vld [vmem:[%s668_s0 + $0x8] sm:$0xff]  ;;  %v44_v3 = vld [vmem:[%s668_s0 + $0x10] sm:$0xff] }
  0x23   :  { %450 = vmatpush3.msra.mxu1 %v88_v39  ;;  %413 = vmatprep.subr.mxu0 %v71_v40  ;;  %v50_v62 = vld [vmem:[#allocation2] sm:$0xff]  ;;  %v47_v4 = vld [vmem:[%s668_s0 + $0x28] sm:$0xff]  ;;  %v49_v5 = vld [vmem:[%s668_s0 + $0x38] sm:$0xff] }
  0x24   :  { %451 = vmatprep.subr.mxu1 %v103_v41  ;;  %414 = vmatpush3.msra.mxu0 %v55_v42  ;;  %v82_v0 = vld [vmem:[#allocation2 + $0x100] sm:$0xff]  ;;  %v299_v6 = vld [vmem:[%s671_s3 + $0x78] sm:$0xff]  ;;  %v48_v8 = vld [vmem:[%s668_s0 + $0x30] sm:$0xff] }
  0x25   :  { %452 = vmatpush3.msra.mxu1 %v87_v43  ;;  %415 = vmatprep.subr.mxu0 %v70_v44  ;;  %v42_v2 = vld [vmem:[%s668_s0] sm:$0xff]  ;;  %v298_v9 = vld [vmem:[%s671_s3 + $0x70] sm:$0xff]  ;;  %v297_v10 = vld [vmem:[%s671_s3 + $0x68] sm:$0xff] }
  0x26   :  { %453 = vmatprep.subr.mxu1 %v102_v45  ;;  %416 = vmatpush3.msra.mxu0 %v54_v46  ;;  %v46_v7 = vld [vmem:[%s668_s0 + $0x20] sm:$0xff]  ;;  %v295_v12 = vld [vmem:[%s671_s3 + $0x58] sm:$0xff]  ;;  %v294_v13 = vld [vmem:[%s671_s3 + $0x50] sm:$0xff] }
  0x27   :  { %454 = vmatpush3.msra.mxu1 %v86_v47  ;;  %417 = vmatprep.subr.mxu0 %v69_v48  ;;  %v296_v11 = vld [vmem:[%s671_s3 + $0x60] sm:$0xff]  ;;  %v293_v14 = vld [vmem:[%s671_s3 + $0x48] sm:$0xff]  ;;  %v291_v16 = vld [vmem:[%s671_s3 + $0x38] sm:$0xff] }
  0x28   :  { %455 = vmatprep.subr.mxu1 %v101_v49  ;;  %418 = vmatpush3.msra.mxu0 %v53_v50  ;;  %v292_v15 = vld [vmem:[%s671_s3 + $0x40] sm:$0xff]  ;;  %v290_v17 = vld [vmem:[%s671_s3 + $0x30] sm:$0xff]  ;;  %v289_v18 = vld [vmem:[%s671_s3 + $0x28] sm:$0xff] }
  0x29   :  { %456 = vmatpush3.msra.mxu1 %v85_v51  ;;  %419 = vmatprep.subr.mxu0 %v68_v52  ;;  %v288_v19 = vld [vmem:[%s671_s3 + $0x20] sm:$0xff]  ;;  %v287_v20 = vld [vmem:[%s671_s3 + $0x18] sm:$0xff]  ;;  %v286_v21 = vld [vmem:[%s671_s3 + $0x10] sm:$0xff] }
  0x2a   :  { %457 = vmatprep.subr.mxu1 %v100_v53  ;;  %420 = vmatpush3.msra.mxu0 %v52_v54  ;;  %v285_v22 = vld [vmem:[%s671_s3 + $0x8] sm:$0xff]  ;;  %v284_v23 = vld [vmem:[%s671_s3] sm:$0xff] }
  0x2b   :  { %458 = vmatpush3.msra.mxu1 %v84_v55  ;;  %421 = vmatprep.subr.mxu0 %v67_v56  ;;  %v391_v35 = vld [vmem:[%s670_s2] ss:$0 sm:$0xff] }
  0x2c   :  { %459 = vmatprep.subr.mxu1 %v99_v57  ;;  %422 = vmatpush3.msra.mxu0 %v51_v58  ;;  %v392_v43 = vld [vmem:[%s672_s4] ss:$0 sm:$0xff] }
  0x2d   :  { %460 = vmatpush3.msra.mxu1 %v83_v59  ;;  %423 = vmatprep.subr.mxu0 %v66_v60 }
  0x2e   :  { %461 = vmatprep.subr.mxu1 %v98_v61  ;;  %424 = vmatpush3.msra.mxu0 %v50_v62 }
  0x2f   :  { %178 = vmatprep.mubr.f32.mxu0 %v43_v63  ;;  %462 = vmatpush3.msra.mxu1 %v82_v0 }
  0x30   :  { %253 = vmatprep.mubr.f32.mxu1 %v45_v1  ;;  %179 = vmatmul.mubr.f32.vlgmr.msra.gmra.mxu0 %v42_v2 }
  0x31   :  { %254 = vmatmul.mubr.f32.vlgmr.msra.gmra.mxu1 %v44_v3  ;;  %183 = vmatprep.mubr.f32.mxu0 %v47_v4 }
  0x32   :  { %258 = vmatprep.mubr.f32.mxu1 %v49_v5  ;;  %487 = vmatprep.subr.mxu0 %v299_v6 }
  0x33   :  { %488 = vmatpush3.msra.mxu0 %v299_v6 }
  0x34   :  { %184 = vmatmul.mubr.f32.gmra.mxu0 %v46_v7  ;;  %489 = vmatprep.subr.mxu0 %v298_v9 }
  0x35   :  { %259 = vmatmul.mubr.f32.gmra.mxu1 %v48_v8  ;;  %490 = vmatpush3.msra.mxu0 %v298_v9 }
  0x36   :  { %491 = vmatprep.subr.mxu0 %v297_v10 }
  0x37   :  { %492 = vmatpush3.msra.mxu0 %v297_v10 }
  0x38   :  { %493 = vmatprep.subr.mxu0 %v296_v11 }
  0x39   :  { %494 = vmatpush3.msra.mxu0 %v296_v11 }
  0x3a   :  { %495 = vmatprep.subr.mxu0 %v295_v12 }
  0x3b   :  { %496 = vmatpush3.msra.mxu0 %v295_v12 }
  0x3c   :  { %497 = vmatprep.subr.mxu0 %v294_v13 }
  0x3d   :  { %498 = vmatpush3.msra.mxu0 %v294_v13 }
  0x3e   :  { %499 = vmatprep.subr.mxu0 %v293_v14 }
  0x3f   :  { %500 = vmatpush3.msra.mxu0 %v293_v14 }
  0x40   :  { %501 = vmatprep.subr.mxu0 %v292_v15 }
  0x41   :  { %502 = vmatpush3.msra.mxu0 %v292_v15 }
  0x42   :  { %503 = vmatprep.subr.mxu0 %v291_v16 }
  0x43   :  { %504 = vmatpush3.msra.mxu0 %v291_v16 }
  0x44   :  { %505 = vmatprep.subr.mxu0 %v290_v17 }
  0x45   :  { %506 = vmatpush3.msra.mxu0 %v290_v17 }
  0x46   :  { %507 = vmatprep.subr.mxu0 %v289_v18 }
  0x47   :  { %508 = vmatpush3.msra.mxu0 %v289_v18 }
  0x48   :  { %509 = vmatprep.subr.mxu0 %v288_v19 }
  0x49   :  { %510 = vmatpush3.msra.mxu0 %v288_v19 }
  0x4a   :  { %511 = vmatprep.subr.mxu0 %v287_v20 }
  0x4b   :  { %512 = vmatpush3.msra.mxu0 %v287_v20 }
  0x4c   :  { %513 = vmatprep.subr.mxu0 %v286_v21 }
  0x4d   :  { %514 = vmatpush3.msra.mxu0 %v286_v21 }
  0x4e   :  { %515 = vmatprep.subr.mxu0 %v285_v22 }
  0x4f   :  { %516 = vmatpush3.msra.mxu0 %v285_v22 }
  0x50   :  { %517 = vmatprep.subr.mxu0 %v284_v23 }
  0x51   :  { %518 = vmatpush3.msra.mxu0 %v284_v23 }
  0xf0   :  { %v425_v24 = vpop.f32.mrf.mxu0 }
  0xf1   :  { %v463_v25 = vpop.f32.mrf.mxu1 }
  0xf2   :  { %v426_v26 = vpop.f32.mrf.mxu0 }
  0xf3   :  { %v464_v27 = vpop.f32.mrf.mxu1  ;;  %v427_v28 = vadd.f32 %v426_v26, %v425_v24 }
  0xf4   :  { %v465_v29 = vadd.f32 %v464_v27, %v463_v25  ;;  %v428_v30 = vpop.f32.mrf.mxu0 }
  0xf5   :  { %v466_v31 = vpop.f32.mrf.mxu1 }
  0xf6   :  { %v256_v32 = vadd.f32 %v465_v29, %v427_v28  ;;  %v429_v33 = vpop.f32.mrf.mxu0 }
  0xf7   :  { %v467_v34 = vpop.f32.mrf.mxu1  ;;  %v430_v36 = vadd.f32 %v429_v33, %v428_v30 }
  0xf8   :  { %v468_v37 = vadd.f32 %v467_v34, %v466_v31  ;;  %v280_v39 = vadd.f32 %v391_v35, %v256_v32 }
  0xfa   :  { %v261_v38 = vadd.f32 %v468_v37, %v430_v36  ;;  %v282_v40 = vmax.f32 %v280_v39, 0.0 }
  0xfc   :  { %v281_v41 = vadd.f32 %v391_v35, %v261_v38  ;;  %519 = vmatprep.mubr.f32.mxu0 %v282_v40 }
  0xfe   :  { %v283_v42 = vmax.f32 %v281_v41, 0.0 }
 0x100   :  { %520 = vmatmul.mubr.f32.vlgmr.msra.gmra.mxu0 %v283_v42 }
 0x1c0   :  { %v521_v44 = vpop.f32.mrf.mxu0 }
 0x1c1   :  { %v379_v45 = vadd.f32 %v521_v44, %v392_v43 }
 0x1c2   :  { %v373_v46 = vpop.f32.mrf.mxu0 }
 0x1c3   :  { %v383_v47 = vmax.f32 %v379_v45, 0.0  ;;  %v374_v48 = vadd.f32 %v392_v43, %v373_v46 }
 0x1c5   :  { %385 = vst [vmem:[%s673_s5 + $0x8] sm:$0xff] %v383_v47  ;;  %v382_v49 = vmax.f32 %v374_v48, 0.0 }
 0x1c7   :  { %384 = vst [vmem:[%s673_s5] sm:$0xff] %v382_v49 }
 0x1c8   :  { %390 = vsyncpa [#allocation3], 1 }

</bundles_post_ra>
